<compile_context>
chip_gen: v5e
topology: v5e:2x2
jax: 0.10.0
libtpu: 0.0.40
codegen_flags: <defaults>
</compile_context>

<pallas_src>
import jax
import jax.numpy as jnp
from jax.experimental import pallas as pl
from jax.experimental.pallas import tpu as pltpu


def _round_up(x: int, m: int) -> int:
    return ((x + m - 1) // m) * m


def mlp_kernel(x_ref, w1_ref, b1_ref, w2_ref, b2_ref, w3_ref, b3_ref, o_ref):
    """Fused 3-layer MLP for one batch tile.

    x_ref : (tb, D)     activation tile (batch on sublanes)
    w*    : (in, out)   resident weights (transposed vs. PyTorch)
    b*    : (1, out)    resident fp32 biases
    o_ref : (1, tb)     lane-dense output row for this tile
    """
    x = x_ref[...]

    # fc1 + ReLU  (MXU matmul, f32 accumulation; bias/activation math in f32)
    h1 = jnp.dot(x, w1_ref[...], preferred_element_type=jnp.float32) + b1_ref[...]
    h1 = jnp.maximum(h1, 0.0)

    # fc2 + ReLU
    h2 = jnp.dot(h1.astype(w2_ref.dtype), w2_ref[...],
                 preferred_element_type=jnp.float32) + b2_ref[...]
    h2 = jnp.maximum(h2, 0.0)

    # fc3 (32 -> 1), emitted directly in lane-dense (1, tb) layout via a
    # transposed-RHS contraction: out[0, m] = sum_k w3[0, k] * h2[m, k]
    out = jax.lax.dot_general(
        w3_ref[...], h2.astype(w3_ref.dtype),
        dimension_numbers=(((1,), (1,)), ((), ())),
        preferred_element_type=jnp.float32)

    o_ref[...] = (out + b3_ref[...]).astype(o_ref.dtype)


def mlp_forward(x, params, *, tb=512, compute_dtype=jnp.float32):
    """x: (B, input_dim) float32. params: (in,out)-layout weights + (1,out) biases.

    tb: batch tile (multiple of 8). 512 is a good default for fp32; it is clamped
    to the padded batch so small inputs still work. Returns (B, 1) float32.
    """
    B, D = x.shape
    assert tb % 8 == 0, "batch tile must be a multiple of 8 (f32 sublane packing)"

    cdt = jnp.dtype(compute_dtype)
    tb_eff = min(tb, _round_up(B, 8))
    B_pad = _round_up(B, tb_eff)
    n_tiles = B_pad // tb_eff

    if B_pad != B:
        x = jnp.pad(x, ((0, B_pad - B), (0, 0)))

    # Matmul operands optionally in bf16 (halves HBM bytes for streaming x);
    # biases stay fp32 so all VPU math (bias add / ReLU) is fp32 on every TPU gen.
    xq = x.astype(cdt)
    w1 = params["w1"].astype(cdt)
    w2 = params["w2"].astype(cdt)
    w3 = params["w3"].reshape(1, -1).astype(cdt)        # (1, 32) row
    b1 = params["b1"].astype(jnp.float32)
    b2 = params["b2"].astype(jnp.float32)
    b3 = params["b3"].reshape(1, 1).astype(jnp.float32)

    # Whole-array specs with constant block index: DMA'd once, then resident in
    # VMEM across the whole grid (Pallas skips re-copies when the window is
    # unchanged). Total ~12 KB, so residency is essentially free.
    full = lambda a: pl.BlockSpec(a.shape, lambda i, _a=a: (0,) * _a.ndim)

    # Rough VMEM budget: double-buffered x / out tiles + resident params. Only
    # raise the scoped limit when a large (tb, D) actually needs it (v7x has just
    # 64 MiB physical VMEM, so we never blindly ask for huge limits).
    est = (4 * tb_eff * D * cdt.itemsize                      # 2 x-buffers, 2x margin
           + 4 * tb_eff * 4                                   # 2 out-buffers, 2x margin
           + sum(int(a.size) * a.dtype.itemsize for a in (w1, b1, w2, b2, w3, b3)))
    cp_kwargs = {"dimension_semantics": ("parallel",)}        # megacore-split batch axis
    if est > 24 * 1024 * 1024:
        cp_kwargs["vmem_limit_bytes"] = min(2 * est, 100 * 1024 * 1024)

    out_tiles = pl.pallas_call(
        mlp_kernel,
        out_shape=jax.ShapeDtypeStruct((n_tiles, 1, tb_eff), jnp.float32),
        grid=(n_tiles,),
        in_specs=[
            pl.BlockSpec((tb_eff, D), lambda i: (i, 0)),      # streamed x tile
            full(w1), full(b1),
            full(w2), full(b2),
            full(w3), full(b3),
        ],
        # Leading tile axis squeezed; kernel sees a lane-dense (1, tb) block.
        out_specs=pl.BlockSpec((None, 1, tb_eff), lambda i: (i, 0, 0)),
        compiler_params=pltpu.CompilerParams(**cp_kwargs),
    )(xq, w1, b1, w2, b2, w3, b3)

    return out_tiles.reshape(B_pad, 1)[:B]


def init_params(key, input_dim):
    """Deterministic synthetic init matching nn.Linear shapes (stored as (in, out))."""
    ks = jax.random.split(key, 6)

    def lin(kw, kb, fan_in, fan_out):
        bound = 1.0 / jnp.sqrt(fan_in)
        w = jax.random.uniform(kw, (fan_in, fan_out), jnp.float32, -bound, bound)
        b = jax.random.uniform(kb, (1, fan_out), jnp.float32, -bound, bound)
        return w, b

    w1, b1 = lin(ks[0], ks[1], input_dim, 64)
    w2, b2 = lin(ks[2], ks[3], 64, 32)
    w3, b3 = lin(ks[4], ks[5], 32, 1)
    return {"w1": w1, "b1": b1, "w2": w2, "b2": b2, "w3": w3, "b3": b3}


def mlp_reference(x, p):
    h1 = jnp.maximum(x @ p["w1"] + p["b1"], 0.0)
    h2 = jnp.maximum(h1 @ p["w2"] + p["b2"], 0.0)
    return h2 @ p["w3"] + p["b3"]


if __name__ == "__main__":
    key = jax.random.PRNGKey(0)
    k_x, k_p, k_x2 = jax.random.split(key, 3)

    batch, input_dim = 8, 16
    x = jax.random.normal(k_x, (batch, input_dim), dtype=jnp.float32)
    params = init_params(k_p, input_dim)

    # Primary small test (fp32, single tile).
    out = jax.block_until_ready(mlp_forward(x, params))
    ref = mlp_reference(x, params)
    assert out.shape == (batch, 1), out.shape
    assert jnp.allclose(out, ref, atol=1e-5, rtol=1e-5), "fp32 mismatch vs reference"

    # Ragged batch + multi-step grid: exercises padding, resident-weight reuse and
    # the lane-dense multi-tile output path.
    batch2 = 50
    x2 = jax.random.normal(k_x2, (batch2, input_dim), dtype=jnp.float32)
    out2 = jax.block_until_ready(mlp_forward(x2, params, tb=16))
    ref2 = mlp_reference(x2, params)
    assert out2.shape == (batch2, 1), out2.shape
    assert jnp.allclose(out2, ref2, atol=1e-5, rtol=1e-5), "multi-tile mismatch vs reference"

    # Optional bf16-input path (fp32 accumulation) — loose tolerance vs fp32 reference.
    out_bf = jax.block_until_ready(
        mlp_forward(x2, params, tb=16, compute_dtype=jnp.bfloat16))
    assert out_bf.shape == (batch2, 1), out_bf.shape
    assert jnp.allclose(out_bf, ref2, atol=1e-1, rtol=1e-1), "bf16 path mismatch"

    print("KERNEL_OK")
</pallas_src>

<mosaic_0001>
module attributes {stable_mosaic.version = 11 : i64} {
  func.func @mlp_kernel(%arg0: i32, %arg1: memref<8x16xf32, #tpu.memory_space<vmem>>, %arg2: memref<16x64xf32, #tpu.memory_space<vmem>>, %arg3: memref<1x64xf32, #tpu.memory_space<vmem>>, %arg4: memref<64x32xf32, #tpu.memory_space<vmem>>, %arg5: memref<1x32xf32, #tpu.memory_space<vmem>>, %arg6: memref<1x32xf32, #tpu.memory_space<vmem>>, %arg7: memref<1x1xf32, #tpu.memory_space<vmem>>, %arg8: memref<1x1x8xf32, #tpu.memory_space<vmem>>) attributes {dimension_semantics = [#tpu.dimension_semantics<parallel>], iteration_bounds = array<i64: 1>, scalar_prefetch = 0 : i64, scratch_operands = 0 : i64, tpu.core_type = #tpu.core_type<tc>, window_params = [{transform_indices = @transform_0, window_bounds = array<i64: 8, 16>}, {pipeline_mode = #tpu.pipeline_mode<synchronous>, transform_indices = @transform_1, window_bounds = array<i64: 16, 64>}, {pipeline_mode = #tpu.pipeline_mode<synchronous>, transform_indices = @transform_2, window_bounds = array<i64: 1, 64>}, {pipeline_mode = #tpu.pipeline_mode<synchronous>, transform_indices = @transform_3, window_bounds = array<i64: 64, 32>}, {pipeline_mode = #tpu.pipeline_mode<synchronous>, transform_indices = @transform_4, window_bounds = array<i64: 1, 32>}, {pipeline_mode = #tpu.pipeline_mode<synchronous>, transform_indices = @transform_5, window_bounds = array<i64: 1, 32>}, {pipeline_mode = #tpu.pipeline_mode<synchronous>, transform_indices = @transform_6, window_bounds = array<i64: 1, 1>}, {transform_indices = @transform_7, window_bounds = array<i64: 1, 1, 8>}]} {
    %c0 = arith.constant 0 : index
    %c0_0 = arith.constant 0 : index
    %0 = vector.load %arg1[%c0, %c0_0] : memref<8x16xf32, #tpu.memory_space<vmem>>, vector<8x16xf32>
    %c0_1 = arith.constant 0 : index
    %c0_2 = arith.constant 0 : index
    %1 = vector.load %arg2[%c0_1, %c0_2] : memref<16x64xf32, #tpu.memory_space<vmem>>, vector<16x64xf32>
    %cst = arith.constant dense<0.000000e+00> : vector<8x64xf32>
    %2 = tpu.matmul %0, %1, %cst {dimension_numbers = #tpu.dot_dimension_numbers<[1], [0], [0], [1], [0, 0, 1, 1], [], []>} : vector<8x16xf32>, vector<16x64xf32>, vector<8x64xf32> -> vector<8x64xf32>
    %c0_3 = arith.constant 0 : index
    %c0_4 = arith.constant 0 : index
    %3 = vector.load %arg3[%c0_3, %c0_4] : memref<1x64xf32, #tpu.memory_space<vmem>>, vector<1x64xf32>
    %4 = vector.broadcast %3 : vector<1x64xf32> to vector<8x64xf32>
    %5 = arith.addf %2, %4 : vector<8x64xf32>
    %cst_5 = arith.constant 0.000000e+00 : f32
    %6 = vector.broadcast %cst_5 : f32 to vector<8x64xf32>
    %7 = arith.maximumf %5, %6 : vector<8x64xf32>
    %c0_6 = arith.constant 0 : index
    %c0_7 = arith.constant 0 : index
    %8 = vector.load %arg4[%c0_6, %c0_7] : memref<64x32xf32, #tpu.memory_space<vmem>>, vector<64x32xf32>
    %cst_8 = arith.constant dense<0.000000e+00> : vector<8x32xf32>
    %9 = tpu.matmul %7, %8, %cst_8 {dimension_numbers = #tpu.dot_dimension_numbers<[1], [0], [0], [1], [0, 0, 1, 1], [], []>} : vector<8x64xf32>, vector<64x32xf32>, vector<8x32xf32> -> vector<8x32xf32>
    %c0_9 = arith.constant 0 : index
    %c0_10 = arith.constant 0 : index
    %10 = vector.load %arg5[%c0_9, %c0_10] : memref<1x32xf32, #tpu.memory_space<vmem>>, vector<1x32xf32>
    %11 = vector.broadcast %10 : vector<1x32xf32> to vector<8x32xf32>
    %12 = arith.addf %9, %11 : vector<8x32xf32>
    %cst_11 = arith.constant 0.000000e+00 : f32
    %13 = vector.broadcast %cst_11 : f32 to vector<8x32xf32>
    %14 = arith.maximumf %12, %13 : vector<8x32xf32>
    %c0_12 = arith.constant 0 : index
    %c0_13 = arith.constant 0 : index
    %15 = vector.load %arg6[%c0_12, %c0_13] : memref<1x32xf32, #tpu.memory_space<vmem>>, vector<1x32xf32>
    %cst_14 = arith.constant dense<0.000000e+00> : vector<1x8xf32>
    %16 = tpu.matmul %15, %14, %cst_14 {dimension_numbers = #tpu.dot_dimension_numbers<[1], [1], [0], [0], [0, 0, 1, 0], [], []>} : vector<1x32xf32>, vector<8x32xf32>, vector<1x8xf32> -> vector<1x8xf32>
    %c0_15 = arith.constant 0 : index
    %c0_16 = arith.constant 0 : index
    %17 = vector.load %arg7[%c0_15, %c0_16] : memref<1x1xf32, #tpu.memory_space<vmem>>, vector<1x1xf32>
    %18 = vector.broadcast %17 : vector<1x1xf32> to vector<1x8xf32>
    %19 = arith.addf %16, %18 : vector<1x8xf32>
    %c0_17 = arith.constant 0 : index
    %c0_18 = arith.constant 0 : index
    %c0_19 = arith.constant 0 : index
    %20 = vector.load %arg8[%c0_17, %c0_18, %c0_19] : memref<1x1x8xf32, #tpu.memory_space<vmem>>, vector<1x1x8xf32>
    %21 = vector.shape_cast %20 : vector<1x1x8xf32> to vector<1x8xf32>
    %22 = vector.shape_cast %19 : vector<1x8xf32> to vector<1x1x8xf32>
    tpu.vector_store %arg8[%c0_17, %c0_18, %c0_19], %22 {strides = array<i32>} : memref<1x1x8xf32, #tpu.memory_space<vmem>>, vector<1x1x8xf32>,
    return
  }
  func.func @transform_0(%arg0: i32) -> (i32, i32) {
    %c0_i32 = arith.constant 0 : i32
    %c0_i32_0 = arith.constant 0 : i32
    return %arg0, %c0_i32 : i32, i32
  }
  func.func @transform_1(%arg0: i32) -> (i32, i32) {
    %c0_i32 = arith.constant 0 : i32
    %c0_i32_0 = arith.constant 0 : i32
    %c0_i32_1 = arith.constant 0 : i32
    return %c0_i32, %c0_i32_0 : i32, i32
  }
  func.func @transform_2(%arg0: i32) -> (i32, i32) {
    %c0_i32 = arith.constant 0 : i32
    %c0_i32_0 = arith.constant 0 : i32
    %c0_i32_1 = arith.constant 0 : i32
    return %c0_i32, %c0_i32_0 : i32, i32
  }
  func.func @transform_3(%arg0: i32) -> (i32, i32) {
    %c0_i32 = arith.constant 0 : i32
    %c0_i32_0 = arith.constant 0 : i32
    %c0_i32_1 = arith.constant 0 : i32
    return %c0_i32, %c0_i32_0 : i32, i32
  }
  func.func @transform_4(%arg0: i32) -> (i32, i32) {
    %c0_i32 = arith.constant 0 : i32
    %c0_i32_0 = arith.constant 0 : i32
    %c0_i32_1 = arith.constant 0 : i32
    return %c0_i32, %c0_i32_0 : i32, i32
  }
  func.func @transform_5(%arg0: i32) -> (i32, i32) {
    %c0_i32 = arith.constant 0 : i32
    %c0_i32_0 = arith.constant 0 : i32
    %c0_i32_1 = arith.constant 0 : i32
    return %c0_i32, %c0_i32_0 : i32, i32
  }
  func.func @transform_6(%arg0: i32) -> (i32, i32) {
    %c0_i32 = arith.constant 0 : i32
    %c0_i32_0 = arith.constant 0 : i32
    %c0_i32_1 = arith.constant 0 : i32
    return %c0_i32, %c0_i32_0 : i32, i32
  }
  func.func @transform_7(%arg0: i32) -> (i32, i32, i32) {
    %c0_i32 = arith.constant 0 : i32
    %c0_i32_0 = arith.constant 0 : i32
    %c0_i32_1 = arith.constant 0 : i32
    return %arg0, %c0_i32, %c0_i32_0 : i32, i32, i32
  }
}

</mosaic_0001>

<bundles_post_ra>
// kernel: tpu_custom_call.1
= control target key start
LH: loop header
LB: loop body
LE: loop exit
PB: predicated region body
PF: predicated region fallthrough
CT: control target
= control target key end

     0   :  { %s276_s0 = inlined_call_operand.vmem [shape: f32[8,16], index: 0, kind: input, shape index: {}]   ;;  %s277_s1 = inlined_call_operand.vmem [shape: f32[16,64], index: 1, kind: input, shape index: {}]   ;;  %s278_s2 = inlined_call_operand.vmem [shape: f32[1,64], index: 2, kind: input, shape index: {}]   ;;  %s279_s3 = inlined_call_operand.vmem [shape: f32[64,32], index: 3, kind: input, shape index: {}]   ;;  %s280_s4 = inlined_call_operand.vmem [shape: f32[1,32], index: 4, kind: input, shape index: {}]   ;;  %s281_s5 = inlined_call_operand.vmem [shape: f32[1,32], index: 5, kind: input, shape index: {}]   ;;  %s282_s6 = inlined_call_operand.<no memory space> [shape: f32[1,1], index: 6, kind: input, shape index: {}]   ;;  %s283_s7 = inlined_call_operand.hbm [shape: f32[1,1,8], index: 7, kind: output, shape index: {}]  }
   0x1   :  { %v12_v0 = vstv %s282_s6 }
   0x2   :  { %13 = vst [vmem:[#allocation2] sm:$0x1] %v12_v0 }
   0x3   :  { %v31_v1 = vld [vmem:[%s277_s1 + $0x8] sm:$0xff]  ;;  %v30_v2 = vld [vmem:[%s277_s1] sm:$0xff]  ;;  %vm36_vm0 = vcmask 130048   ;;  %v68_v4 = vld [vmem:[%s279_s3 + $0x38] sm:$0xff] }
   0x4   :  { %54 = vmatpush.msra.mxu0 %v31_v1  ;;  %v29_v3 = vld [vmem:[%s276_s0] sm:$0xff]  ;;  %v67_v5 = vld [vmem:[%s279_s3 + $0x30] sm:$0xff]  ;;  %85 = vmatpush.msra.mxu1 %v68_v4  ;;  %v66_v6 = vld [vmem:[%s279_s3 + $0x28] sm:$0xff] }
   0x6   :  { %55 = vmatpush.msra.mxu0 %v30_v2 }
   0x7   :  { %14 = vsyncpa [#allocation4], 0  ;;  %151 = vmatmul.msk.f32.vlgmr.msra.gmra.mxu0 %vm36_vm0, %v29_v3  ;;  %86 = vmatpush.msra.mxu1 %v67_v5  ;;  %v65_v7 = vld [vmem:[%s279_s3 + $0x20] sm:$0xff]  ;;  %v64_v8 = vld [vmem:[%s279_s3 + $0x18] sm:$0xff]  ;;  %vm73_vm1 = vcmask 523264   ;;  %v186_v17 = vmov 0  }
   0x8   :  { %v63_v9 = vld [vmem:[%s279_s3 + $0x10] sm:$0xff]  ;;  %v62_v10 = vld [vmem:[%s279_s3 + $0x8] sm:$0xff]  ;;  %v61_v11 = vld [vmem:[%s279_s3] sm:$0xff]  ;;  %157 = vset.pattern.permute.xlu0 %v186_v17  ;;  %vm106_vm2 = vcmask 261120   ;;  %s187_s26 = smov [#allocation3]   ;;  %s142_s30 = sshll.u32 %s283_s7, 4  ;;  %s143_s30 = int_to_ptr.hbm [resolvable:$true] %s142_s30 }
   0x9   :  { %87 = vmatpush.msra.mxu1 %v66_v6  ;;  %v158_v12 = vld [vmem:[%s278_s2] ss:$0 sm:$0xff]  ;;  %s140_s27 = sshll.u32 %s187_s26, 4  ;;  %vm133_vm3 = vcmask 57344   ;;  %s141_s27 = int_to_ptr.vmem [resolvable:$true] %s140_s27 }
   0xa   :  { %v99_v16 = vld [vmem:[#allocation2] sm:$0x1] }
   0xb   :  { %88 = vmatpush.msra.mxu1 %v65_v7  ;;  %102 = vperm.xlu0 %157, %v99_v16   ;;  %v159_v18 = vld [vmem:[%s280_s4] ss:$0 sm:$0xff] }
   0xc   :  { %v98_v22 = vld [vmem:[%s281_s5] sm:$0x1] }
   0xd   :  { %89 = vmatpush.msra.mxu1 %v64_v8 }
   0xf   :  { %90 = vmatpush.msra.mxu1 %v63_v9 }
  0x11   :  { %91 = vmatpush.msra.mxu1 %v62_v10 }
  0x13   :  { %92 = vmatpush.msra.mxu1 %v61_v11 }
  0x7d   :  { %v103_v23 = vpop.permute.xlu0 %102 }
  0x7e   :  { %v105_v24 = vperm.slane %v103_v23, 0 }
  0x84   :  { %v57_v13 = vpop.f32.mrf.mxu0 }
  0x85   :  { %v58_v14 = vadd.f32 %v158_v12, %v57_v13 }
  0x87   :  { %v60_v15 = vmax.f32 %v58_v14, 0.0 }
  0x89   :  { %152 = vmatmul.msk.f32.vlgmr.msra.gmra.mxu1 %vm73_vm1, %v60_v15 }
 0x106   :  { %v94_v19 = vpop.f32.mrf.mxu1 }
 0x107   :  { %v95_v20 = vadd.f32 %v159_v18, %v94_v19 }
 0x109   :  { %v97_v21 = vmax.f32 %v95_v20, 0.0 }
 0x10b   :  { %153 = vmatpush.xpose.msk.msra.mxu2 %vm106_vm2, %v97_v21 }
 0x10e   :  { %154 = vmatmul.msk.f32.vlgmr.msra.gmra.mxu2 %vm106_vm2, %v98_v22 }
 0x191   :  { %v130_v25 = vpop.f32.mrf.mxu2 }
 0x192   :  { %v131_v26 = vadd.f32 %v130_v25, %v105_v24 }
 0x194   :  { %134 = vst.msk [vmem:[#allocation3] sm:$0x1] %vm133_vm3, %v131_v26 }
 0x195   :  { %145 = dma.vmem_to_hbm [thread:$0]  %s141_s27, 16, %s143_s30, [#allocation4]  }
 0x196   :  { %184 = dma.done.wait [#allocation4], 16  }
 0x197   :  { %185 = vsyncadd [#allocation4], 4294967280 }
 0x198   :  { %150 = vsyncpa [#allocation4], 1 }

</bundles_post_ra>
